<compile_context>
chip_gen: v5e
topology: v5e:2x2
jax: 0.10.0
libtpu: 0.0.40
codegen_flags: <defaults>
</compile_context>

<pallas_src>
import functools

import jax
import jax.numpy as jnp
from jax.experimental import pallas as pl
from jax.experimental.pallas import tpu as pltpu


def _round_up(x, m):
    return ((x + m - 1) // m) * m


def policy_net_kernel(x_ref, w1_ref, b1_ref, w2_ref, b2_ref, w3_ref, b3_ref, out_ref):
    """Fused: relu(x@W1+b1) -> relu(@W2+b2) -> softmax(@W3+b3, axis=-1).

    x / W* are bf16, accumulation is f32; biases are f32. Padded logit
    columns carry a -1e30 bias so exp() underflows to 0 and they do not
    affect the softmax normalization.
    """
    x = x_ref[...]  # bf16 [TILE_B, S_pad]

    # fc1 + ReLU
    h1 = jnp.dot(x, w1_ref[...], preferred_element_type=jnp.float32) + b1_ref[...]
    h1 = jnp.maximum(h1, 0.0).astype(jnp.bfloat16)

    # fc2 + ReLU
    h2 = jnp.dot(h1, w2_ref[...], preferred_element_type=jnp.float32) + b2_ref[...]
    h2 = jnp.maximum(h2, 0.0).astype(jnp.bfloat16)

    # fc3 + softmax over the (lane-padded) last dim
    logits = jnp.dot(h2, w3_ref[...], preferred_element_type=jnp.float32) + b3_ref[...]
    m = jnp.max(logits, axis=-1, keepdims=True)
    e = jnp.exp(logits - m)
    denom = jnp.sum(e, axis=-1, keepdims=True)
    out_ref[...] = (e * pl.reciprocal(denom, approx=True)).astype(out_ref.dtype)


@functools.partial(jax.jit, static_argnames=("tile_b",))
def policy_network_forward(x, params, tile_b=256):
    """x: [B, state_dim] float32 -> [B, action_dim] float32 (rows sum to ~1)."""
    w1, b1, w2, b2, w3, b3 = params
    B, S = x.shape
    H = w1.shape[1]
    A = w3.shape[1]

    # Lane-dense input features and output actions: pad both to multiples of 128.
    S_pad = _round_up(S, 128)
    A_pad = _round_up(A, 128)
    # Batch tile: multiple of 8 sublanes, capped at tile_b rows (vreg budget).
    tb = min(tile_b, _round_up(B, 8))
    B_pad = _round_up(B, tb)

    # Input: bf16, zero-padded on batch (extra rows sliced off) and features
    # (zero columns, matched by zero weight rows -> matmul unchanged).
    x_p = x.astype(jnp.bfloat16)
    if (B_pad, S_pad) != (B, S):
        x_p = jnp.pad(x_p, ((0, B_pad - B), (0, S_pad - S)))

    w1_p = w1 if S_pad == S else jnp.pad(w1, ((0, S_pad - S), (0, 0)))

    w3_p, b3_p = w3, b3
    if A_pad != A:
        w3_p = jnp.pad(w3, ((0, 0), (0, A_pad - A)))
        # -1e30 bias on padded columns -> exp underflows to 0 in the softmax.
        b3_p = jnp.pad(b3, ((0, 0), (0, A_pad - A)), constant_values=-1e30)

    grid = (B_pad // tb,)
    out = pl.pallas_call(
        policy_net_kernel,
        out_shape=jax.ShapeDtypeStruct((B_pad, A_pad), jnp.float32),
        grid=grid,
        in_specs=[
            pl.BlockSpec((tb, S_pad), lambda i: (i, 0)),     # x: streamed per tile
            pl.BlockSpec((S_pad, H), lambda i: (0, 0)),      # w1: VMEM-resident
            pl.BlockSpec((1, H), lambda i: (0, 0)),          # b1: resident
            pl.BlockSpec((H, H), lambda i: (0, 0)),          # w2: resident
            pl.BlockSpec((1, H), lambda i: (0, 0)),          # b2: resident
            pl.BlockSpec((H, A_pad), lambda i: (0, 0)),      # w3 (lane-padded)
            pl.BlockSpec((1, A_pad), lambda i: (0, 0)),      # b3 (lane-padded)
        ],
        out_specs=pl.BlockSpec((tb, A_pad), lambda i: (i, 0)),
        compiler_params=pltpu.CompilerParams(
            dimension_semantics=("parallel",),
        ),
    )(x_p, w1_p, b1, w2, b2, w3_p, b3_p)

    return out[:B, :A]


def init_params(key, state_dim, action_dim, hidden=128):
    """Deterministic init mimicking nn.Linear's U(-1/sqrt(fan_in), 1/sqrt(fan_in)).

    Weights stored bf16 (MXU-native), biases f32, layout [in_features, out_features].
    """
    ks = jax.random.split(key, 6)

    def linear(kw, kb, fan_in, fan_out):
        bound = 1.0 / jnp.sqrt(fan_in)
        w = jax.random.uniform(kw, (fan_in, fan_out), jnp.float32, -bound, bound)
        b = jax.random.uniform(kb, (1, fan_out), jnp.float32, -bound, bound)
        return w.astype(jnp.bfloat16), b

    w1, b1 = linear(ks[0], ks[1], state_dim, hidden)
    w2, b2 = linear(ks[2], ks[3], hidden, hidden)
    w3, b3 = linear(ks[4], ks[5], hidden, action_dim)
    return (w1, b1, w2, b2, w3, b3)


def reference_forward(x, params):
    """Pure-JAX f32 reference using the same (bf16-stored) weights."""
    w1, b1, w2, b2, w3, b3 = params
    w1 = w1.astype(jnp.float32)
    w2 = w2.astype(jnp.float32)
    w3 = w3.astype(jnp.float32)
    h1 = jnp.maximum(x @ w1 + b1, 0.0)
    h2 = jnp.maximum(h1 @ w2 + b2, 0.0)
    logits = h2 @ w3 + b3
    return jax.nn.softmax(logits, axis=-1)


if __name__ == "__main__":
    key = jax.random.PRNGKey(0)
    k_params, k_x = jax.random.split(key)

    batch, state_dim, action_dim = 8, 32, 16
    params = init_params(k_params, state_dim, action_dim)
    x = jax.random.normal(k_x, (batch, state_dim), dtype=jnp.float32)

    out = policy_network_forward(x, params)
    out = jax.block_until_ready(out)

    ref = reference_forward(x, params)
    assert out.shape == (batch, action_dim)
    # bf16 activations/weights + approx reciprocal -> looser tolerances than f32.
    assert jnp.allclose(jnp.sum(out, axis=-1), 1.0, atol=5e-3)
    assert jnp.allclose(out, ref, atol=3e-2, rtol=3e-2)

    print("KERNEL_OK")
</pallas_src>

<mosaic_0001>
module attributes {stable_mosaic.version = 11 : i64} {
  func.func @policy_net_kernel(%arg0: i32, %arg1: memref<8x128xbf16, #tpu.memory_space<vmem>>, %arg2: memref<128x128xbf16, #tpu.memory_space<vmem>>, %arg3: memref<1x128xf32, #tpu.memory_space<vmem>>, %arg4: memref<128x128xbf16, #tpu.memory_space<vmem>>, %arg5: memref<1x128xf32, #tpu.memory_space<vmem>>, %arg6: memref<128x128xbf16, #tpu.memory_space<vmem>>, %arg7: memref<1x128xf32, #tpu.memory_space<vmem>>, %arg8: memref<8x128xf32, #tpu.memory_space<vmem>>) attributes {dimension_semantics = [#tpu.dimension_semantics<parallel>], iteration_bounds = array<i64: 1>, scalar_prefetch = 0 : i64, scratch_operands = 0 : i64, tpu.core_type = #tpu.core_type<tc>, window_params = [{transform_indices = @transform_0, window_bounds = array<i64: 8, 128>}, {pipeline_mode = #tpu.pipeline_mode<synchronous>, transform_indices = @transform_1, window_bounds = array<i64: 128, 128>}, {pipeline_mode = #tpu.pipeline_mode<synchronous>, transform_indices = @transform_2, window_bounds = array<i64: 1, 128>}, {pipeline_mode = #tpu.pipeline_mode<synchronous>, transform_indices = @transform_3, window_bounds = array<i64: 128, 128>}, {pipeline_mode = #tpu.pipeline_mode<synchronous>, transform_indices = @transform_4, window_bounds = array<i64: 1, 128>}, {pipeline_mode = #tpu.pipeline_mode<synchronous>, transform_indices = @transform_5, window_bounds = array<i64: 128, 128>}, {pipeline_mode = #tpu.pipeline_mode<synchronous>, transform_indices = @transform_6, window_bounds = array<i64: 1, 128>}, {transform_indices = @transform_7, window_bounds = array<i64: 8, 128>}]} {
    %c0 = arith.constant 0 : index
    %c0_0 = arith.constant 0 : index
    %0 = vector.load %arg1[%c0, %c0_0] : memref<8x128xbf16, #tpu.memory_space<vmem>>, vector<8x128xbf16>
    %c0_1 = arith.constant 0 : index
    %c0_2 = arith.constant 0 : index
    %1 = vector.load %arg2[%c0_1, %c0_2] : memref<128x128xbf16, #tpu.memory_space<vmem>>, vector<128x128xbf16>
    %cst = arith.constant dense<0.000000e+00> : vector<8x128xf32>
    %2 = tpu.matmul %0, %1, %cst {dimension_numbers = #tpu.dot_dimension_numbers<[1], [0], [0], [1], [0, 0, 1, 1], [], []>} : vector<8x128xbf16>, vector<128x128xbf16>, vector<8x128xf32> -> vector<8x128xf32>
    %c0_3 = arith.constant 0 : index
    %c0_4 = arith.constant 0 : index
    %3 = vector.load %arg3[%c0_3, %c0_4] : memref<1x128xf32, #tpu.memory_space<vmem>>, vector<1x128xf32>
    %4 = vector.broadcast %3 : vector<1x128xf32> to vector<8x128xf32>
    %5 = arith.addf %2, %4 : vector<8x128xf32>
    %cst_5 = arith.constant 0.000000e+00 : f32
    %6 = vector.broadcast %cst_5 : f32 to vector<8x128xf32>
    %7 = arith.maximumf %5, %6 : vector<8x128xf32>
    %8 = arith.truncf %7 : vector<8x128xf32> to vector<8x128xbf16>
    %c0_6 = arith.constant 0 : index
    %c0_7 = arith.constant 0 : index
    %9 = vector.load %arg4[%c0_6, %c0_7] : memref<128x128xbf16, #tpu.memory_space<vmem>>, vector<128x128xbf16>
    %cst_8 = arith.constant dense<0.000000e+00> : vector<8x128xf32>
    %10 = tpu.matmul %8, %9, %cst_8 {dimension_numbers = #tpu.dot_dimension_numbers<[1], [0], [0], [1], [0, 0, 1, 1], [], []>} : vector<8x128xbf16>, vector<128x128xbf16>, vector<8x128xf32> -> vector<8x128xf32>
    %c0_9 = arith.constant 0 : index
    %c0_10 = arith.constant 0 : index
    %11 = vector.load %arg5[%c0_9, %c0_10] : memref<1x128xf32, #tpu.memory_space<vmem>>, vector<1x128xf32>
    %12 = vector.broadcast %11 : vector<1x128xf32> to vector<8x128xf32>
    %13 = arith.addf %10, %12 : vector<8x128xf32>
    %cst_11 = arith.constant 0.000000e+00 : f32
    %14 = vector.broadcast %cst_11 : f32 to vector<8x128xf32>
    %15 = arith.maximumf %13, %14 : vector<8x128xf32>
    %16 = arith.truncf %15 : vector<8x128xf32> to vector<8x128xbf16>
    %c0_12 = arith.constant 0 : index
    %c0_13 = arith.constant 0 : index
    %17 = vector.load %arg6[%c0_12, %c0_13] : memref<128x128xbf16, #tpu.memory_space<vmem>>, vector<128x128xbf16>
    %cst_14 = arith.constant dense<0.000000e+00> : vector<8x128xf32>
    %18 = tpu.matmul %16, %17, %cst_14 {dimension_numbers = #tpu.dot_dimension_numbers<[1], [0], [0], [1], [0, 0, 1, 1], [], []>} : vector<8x128xbf16>, vector<128x128xbf16>, vector<8x128xf32> -> vector<8x128xf32>
    %c0_15 = arith.constant 0 : index
    %c0_16 = arith.constant 0 : index
    %19 = vector.load %arg7[%c0_15, %c0_16] : memref<1x128xf32, #tpu.memory_space<vmem>>, vector<1x128xf32>
    %20 = vector.broadcast %19 : vector<1x128xf32> to vector<8x128xf32>
    %21 = arith.addf %18, %20 : vector<8x128xf32>
    %cst_17 = arith.constant dense<0xFF800000> : vector<8xf32>
    %22 = vector.multi_reduction <maximumf>, %21, %cst_17 [1] : vector<8x128xf32> to vector<8xf32>
    %23 = vector.shape_cast %22 : vector<8xf32> to vector<8x1xf32>
    %24 = vector.broadcast %23 : vector<8x1xf32> to vector<8x128xf32>
    %25 = arith.subf %21, %24 : vector<8x128xf32>
    %26 = math.exp %25 : vector<8x128xf32>
    %cst_18 = arith.constant dense<0.000000e+00> : vector<8xf32>
    %27 = vector.multi_reduction <add>, %26, %cst_18 [1] : vector<8x128xf32> to vector<8xf32>
    %28 = vector.shape_cast %27 : vector<8xf32> to vector<8x1xf32>
    %29 = tpu.reciprocal %28 {approx = true} : vector<8x1xf32> -> vector<8x1xf32>
    %30 = vector.broadcast %29 : vector<8x1xf32> to vector<8x128xf32>
    %31 = arith.mulf %26, %30 : vector<8x128xf32>
    %c0_19 = arith.constant 0 : index
    %c0_20 = arith.constant 0 : index
    %32 = vector.load %arg8[%c0_19, %c0_20] : memref<8x128xf32, #tpu.memory_space<vmem>>, vector<8x128xf32>
    tpu.vector_store %arg8[%c0_19, %c0_20], %31 {strides = array<i32>} : memref<8x128xf32, #tpu.memory_space<vmem>>, vector<8x128xf32>,
    return
  }
  func.func @transform_0(%arg0: i32) -> (i32, i32) {
    %c0_i32 = arith.constant 0 : i32
    %c0_i32_0 = arith.constant 0 : i32
    return %arg0, %c0_i32 : i32, i32
  }
  func.func @transform_1(%arg0: i32) -> (i32, i32) {
    %c0_i32 = arith.constant 0 : i32
    %c0_i32_0 = arith.constant 0 : i32
    %c0_i32_1 = arith.constant 0 : i32
    return %c0_i32, %c0_i32_0 : i32, i32
  }
  func.func @transform_2(%arg0: i32) -> (i32, i32) {
    %c0_i32 = arith.constant 0 : i32
    %c0_i32_0 = arith.constant 0 : i32
    %c0_i32_1 = arith.constant 0 : i32
    return %c0_i32, %c0_i32_0 : i32, i32
  }
  func.func @transform_3(%arg0: i32) -> (i32, i32) {
    %c0_i32 = arith.constant 0 : i32
    %c0_i32_0 = arith.constant 0 : i32
    %c0_i32_1 = arith.constant 0 : i32
    return %c0_i32, %c0_i32_0 : i32, i32
  }
  func.func @transform_4(%arg0: i32) -> (i32, i32) {
    %c0_i32 = arith.constant 0 : i32
    %c0_i32_0 = arith.constant 0 : i32
    %c0_i32_1 = arith.constant 0 : i32
    return %c0_i32, %c0_i32_0 : i32, i32
  }
  func.func @transform_5(%arg0: i32) -> (i32, i32) {
    %c0_i32 = arith.constant 0 : i32
    %c0_i32_0 = arith.constant 0 : i32
    %c0_i32_1 = arith.constant 0 : i32
    return %c0_i32, %c0_i32_0 : i32, i32
  }
  func.func @transform_6(%arg0: i32) -> (i32, i32) {
    %c0_i32 = arith.constant 0 : i32
    %c0_i32_0 = arith.constant 0 : i32
    %c0_i32_1 = arith.constant 0 : i32
    return %c0_i32, %c0_i32_0 : i32, i32
  }
  func.func @transform_7(%arg0: i32) -> (i32, i32) {
    %c0_i32 = arith.constant 0 : i32
    %c0_i32_0 = arith.constant 0 : i32
    return %arg0, %c0_i32 : i32, i32
  }
}

</mosaic_0001>

<bundles_post_ra>
// kernel: policy_network_forward.1
= control target key start
LH: loop header
LB: loop body
LE: loop exit
PB: predicated region body
PF: predicated region fallthrough
CT: control target
= control target key end

     0   :  { %s583_s0 = inlined_call_operand.vmem [shape: bf16[8,128], index: 0, kind: input, shape index: {}]   ;;  %s584_s1 = inlined_call_operand.vmem [shape: bf16[128,128], index: 1, kind: input, shape index: {}]   ;;  %s585_s2 = inlined_call_operand.vmem [shape: f32[1,128], index: 2, kind: input, shape index: {}]   ;;  %s586_s3 = inlined_call_operand.vmem [shape: bf16[128,128], index: 3, kind: input, shape index: {}]   ;;  %s587_s4 = inlined_call_operand.vmem [shape: f32[1,128], index: 4, kind: input, shape index: {}]   ;;  %s588_s5 = inlined_call_operand.vmem [shape: bf16[128,128], index: 5, kind: input, shape index: {}]   ;;  %s589_s6 = inlined_call_operand.vmem [shape: f32[1,128], index: 6, kind: input, shape index: {}]   ;;  %s590_s7 = inlined_call_operand.hbm [shape: f32[8,128], index: 7, kind: output, shape index: {}]  }
   0x1   :  { %v404_v0 = vld [vmem:[%s584_s1 + $0x38] sm:$0xff]  ;;  %v403_v1 = vld [vmem:[%s584_s1 + $0x30] sm:$0xff]  ;;  %v402_v4 = vld [vmem:[%s584_s1 + $0x28] sm:$0xff] }
   0x2   :  { %96 = vmatpush.bf16.msra.mxu0 %v404_v0  ;;  %v412_v2 = vld [vmem:[%s586_s3 + $0x38] sm:$0xff]  ;;  %v411_v3 = vld [vmem:[%s586_s3 + $0x30] sm:$0xff] }
   0x3   :  { %179 = vmatpush.bf16.msra.mxu1 %v412_v2 }
   0x6   :  { %97 = vmatpush.bf16.msra.mxu0 %v403_v1 }
   0x7   :  { %12 = vsyncpa [#allocation3], 0  ;;  %180 = vmatpush.bf16.msra.mxu1 %v411_v3  ;;  %v410_v5 = vld [vmem:[%s586_s3 + $0x28] sm:$0xff]  ;;  %v401_v6 = vld [vmem:[%s584_s1 + $0x20] sm:$0xff]  ;;  %s292_s9 = sshll.u32 %s590_s7, 4  ;;  %s293_s9 = int_to_ptr.hbm [resolvable:$true] %s292_s9 }
   0x8   :  { %v409_v7 = vld [vmem:[%s586_s3 + $0x20] sm:$0xff]  ;;  %v400_v8 = vld [vmem:[%s584_s1 + $0x18] sm:$0xff]  ;;  %v399_v10 = vld [vmem:[%s584_s1 + $0x10] sm:$0xff] }
   0x9   :  { %v408_v9 = vld [vmem:[%s586_s3 + $0x18] sm:$0xff]  ;;  %v407_v11 = vld [vmem:[%s586_s3 + $0x10] sm:$0xff]  ;;  %v398_v12 = vld [vmem:[%s584_s1 + $0x8] sm:$0xff] }
   0xa   :  { %98 = vmatpush.bf16.msra.mxu0 %v402_v4  ;;  %v397_v13 = vld [vmem:[%s584_s1] sm:$0xff]  ;;  %v406_v15 = vld [vmem:[%s586_s3 + $0x8] sm:$0xff]  ;;  %v420_v17 = vld [vmem:[%s588_s5 + $0x38] sm:$0xff] }
   0xb   :  { %181 = vmatpush.bf16.msra.mxu1 %v410_v5  ;;  %v27_v14 = vld [vmem:[%s583_s0] sm:$0xf]  ;;  %262 = vmatpush.bf16.msra.mxu2 %v420_v17  ;;  %v419_v18 = vld [vmem:[%s588_s5 + $0x30] sm:$0xff]  ;;  %v418_v19 = vld [vmem:[%s588_s5 + $0x28] sm:$0xff] }
   0xc   :  { %v405_v16 = vld [vmem:[%s586_s3] sm:$0xff]  ;;  %v416_v21 = vld [vmem:[%s588_s5 + $0x18] sm:$0xff]  ;;  %v415_v22 = vld [vmem:[%s588_s5 + $0x10] sm:$0xff] }
   0xd   :  { %v417_v20 = vld [vmem:[%s588_s5 + $0x20] sm:$0xff]  ;;  %v414_v29 = vld [vmem:[%s588_s5 + $0x8] sm:$0xff] }
   0xe   :  { %99 = vmatpush.bf16.msra.mxu0 %v401_v6  ;;  %v422_v23 = vld [vmem:[%s585_s2] ss:$0 sm:$0xff] }
   0xf   :  { %182 = vmatpush.bf16.msra.mxu1 %v409_v7  ;;  %263 = vmatpush.bf16.msra.mxu2 %v419_v18  ;;  %v413_v30 = vld [vmem:[%s588_s5] sm:$0xff] }
  0x10   :  { %v423_v31 = vld [vmem:[%s587_s4] ss:$0 sm:$0xff]  ;;  %s455_s4 = smov [#allocation2]  }
  0x11   :  { %v424_v37 = vld [vmem:[%s589_s6] ss:$0 sm:$0xff]  ;;  %s290_s5 = sshll.u32 %s455_s4, 4  ;;  %s291_s5 = int_to_ptr.vmem [resolvable:$true] %s290_s5 }
  0x12   :  { %100 = vmatpush.bf16.msra.mxu0 %v400_v8 }
  0x13   :  { %183 = vmatpush.bf16.msra.mxu1 %v408_v9  ;;  %264 = vmatpush.bf16.msra.mxu2 %v418_v19 }
  0x16   :  { %101 = vmatpush.bf16.msra.mxu0 %v399_v10 }
  0x17   :  { %184 = vmatpush.bf16.msra.mxu1 %v407_v11  ;;  %265 = vmatpush.bf16.msra.mxu2 %v417_v20 }
  0x1a   :  { %102 = vmatpush.bf16.msra.mxu0 %v398_v12 }
  0x1b   :  { %185 = vmatpush.bf16.msra.mxu1 %v406_v15  ;;  %266 = vmatpush.bf16.msra.mxu2 %v416_v21 }
  0x1e   :  { %103 = vmatpush.bf16.msra.mxu0 %v397_v13 }
  0x1f   :  { %186 = vmatpush.bf16.msra.mxu1 %v405_v16  ;;  %267 = vmatpush.bf16.msra.mxu2 %v415_v22 }
  0x21   :  { %104 = vmatmul.bf16.vlgmr.msra.gmra.mxu0 %v27_v14 }
  0x23   :  { %268 = vmatpush.bf16.msra.mxu2 %v414_v29 }
  0x27   :  { %269 = vmatpush.bf16.msra.mxu2 %v413_v30 }
  0x9e   :  { %v105_v24 = vpop.f32.mrf.mxu0 }
  0x9f   :  { %v106_v25 = vadd.f32 %v422_v23, %v105_v24 }
  0xa1   :  { %v109_v26 = vmax.f32 %v106_v25, 0.0 }
  0xa3   :  { %v110_v27 = vpack.c.bf16 %v109_v26, %v109_v26 }
  0xa5   :  { %187 = vmatmul.bf16.vlgmr.msra.gmra.mxu1 %v110_v27 }
  0xa6   :  { %v107_v28 = vpop.f32.mrf.mxu0 }
 0x122   :  { %v188_v32 = vpop.f32.mrf.mxu1 }
 0x123   :  { %v189_v33 = vadd.f32 %v423_v31, %v188_v32 }
 0x125   :  { %v192_v34 = vmax.f32 %v189_v33, 0.0 }
 0x127   :  { %v193_v35 = vpack.c.bf16 %v192_v34, %v192_v34 }
 0x129   :  { %270 = vmatmul.bf16.vlgmr.msra.gmra.mxu2 %v193_v35 }
 0x12a   :  { %v190_v36 = vpop.f32.mrf.mxu1 }
 0x1ac   :  { %v271_v38 = vpop.f32.mrf.mxu2 }
 0x1ad   :  { %v272_v39 = vadd.f32 %v424_v37, %v271_v38 }
 0x1af   :  { %275 = vmax.xlane.f32.xlu0 %v272_v39 }
 0x1b4   :  { %v273_v40 = vpop.f32.mrf.mxu2 }
 0x222   :  { %v276_v41 = vpop.xlane.xlu0 %275 }
 0x223   :  { %v277_v42 = vsub.f32 %v272_v39, %v276_v41 }
 0x225   :  { %v278_v43 = vmul.f32 1.442695, %v277_v42 }
 0x227   :  { %425 = vpow2.f32 %v278_v43 }
 0x22d   :  { %v426_v44 = vpop.eup %425 }
 0x22e   :  { %280 = vadd.xlane.f32.xlu0 %v426_v44 }
 0x2a1   :  { %v281_v45 = vpop.xlane.xlu0 %280 }
 0x2a2   :  { %427 = vrcp.f32 %v281_v45 }
 0x2a8   :  { %v428_v46 = vpop.eup %427 }
 0x2a9   :  { %v283_v47 = vmul.f32 %v428_v46, %v426_v44 }
 0x2ab   :  { %284 = vst [vmem:[#allocation2] sm:$0xff] %v283_v47 }
 0x2ac   :  { %295 = dma.vmem_to_hbm [thread:$0]  %s291_s5, 128, %s293_s9, [#allocation3]  }
 0x2ad   :  { %453 = dma.done.wait [#allocation3], 128  }
 0x2ae   :  { %454 = vsyncadd [#allocation3], 4294967168 }
 0x2af   :  { %300 = vsyncpa [#allocation3], 1 }

</bundles_post_ra>
